<compile_context>
chip_gen: v7x
topology: tpu7x:2x2x1
jax: 0.10.0
libtpu: 0.0.40
codegen_flags: <defaults>
</compile_context>

<pallas_src>
import functools

import numpy as np
import jax
import jax.numpy as jnp
from jax import lax
from jax.experimental import pallas as pl
from jax.experimental.pallas import tpu as pltpu


# --------------------------------------------------------------------------- #
# Host-side constant builders (cached: built once per (H, W))
# --------------------------------------------------------------------------- #
@functools.lru_cache(maxsize=None)
def _bilinear_upsample_matrix(s):
    """(2s, s) matrix equivalent to F.interpolate(scale=2, bilinear, align_corners=False)."""
    out = 2 * s
    dst = np.arange(out, dtype=np.float64)
    src = np.maximum((dst + 0.5) / 2.0 - 0.5, 0.0)
    lo = np.floor(src).astype(np.int64)
    hi = np.minimum(lo + 1, s - 1)
    frac = src - lo
    A = np.zeros((out, s), dtype=np.float32)
    A[np.arange(out), lo] += (1.0 - frac).astype(np.float32)
    A[np.arange(out), hi] += frac.astype(np.float32)
    return A


@functools.lru_cache(maxsize=None)
def _upsample_flat_matrix_T(H, W):
    """((H/2)*(W/2), H*W): transposed kron(A_h, A_w) for the flattened bilinear x2 upsample.
    Coefficients are multiples of 1/16 -> exact in bf16."""
    Ah = _bilinear_upsample_matrix(H // 2)   # (H, H/2)
    Aw = _bilinear_upsample_matrix(W // 2)   # (W, W/2)
    U = np.kron(Ah, Aw)                      # (H*W, (H/2)*(W/2))
    return np.ascontiguousarray(U.T)


# --------------------------------------------------------------------------- #
# Fused kernel: conv3x3(+bias)+ReLU (on the pooled grid, all 4 window offsets)
#               -> maxpool2 (sublane max) -> 1x1 conv(+bias) -> bilinear x2 upsample.
# Single invocation, batch stacked on the sublane axis.  Exactly 3 MXU matmuls.
# --------------------------------------------------------------------------- #
def fused_kernel(p_ref, wc_ref, bc_ref, w1_ref, b1_ref, ut_ref, o_ref):
    # p_ref : (N*16C, HWq)   bf16  4x4/stride-2 im2col patches (batch stacked on sublanes)
    # wc_ref: (4*N*K, N*16C) bf16  conv taps, 2x2-offset-major rows, block-diagonal over batch
    # bc_ref: (4*N*K, 1)     f32   conv bias per row
    # w1_ref: (N*K2, N*K)    bf16  block-diagonal 1x1 conv weight
    # b1_ref: (N*K2, 1)      f32   1x1 conv bias per row
    # ut_ref: (HWq, HW)      bf16  flattened bilinear x2 upsample matrix (transposed kron)
    # o_ref : (N*K2, HW)     f32
    nk = w1_ref.shape[1]            # N*K rows per window-offset block

    # 3x3 conv (+bias, ReLU) at all 4 positions of every 2x2 pooling window: one MXU
    # contraction over (16 taps x C channels [x N on the block diagonal]).
    y = jnp.dot(wc_ref[...], p_ref[...], preferred_element_type=jnp.float32)   # (4*N*K, HWq)
    y = jnp.maximum(y + bc_ref[...], 0.0)

    # MaxPool2d(2): elementwise max over the 4 offset blocks (aligned sublane slices, no MXU).
    pooled = jnp.maximum(jnp.maximum(y[0 * nk:1 * nk], y[1 * nk:2 * nk]),
                         jnp.maximum(y[2 * nk:3 * nk], y[3 * nk:4 * nk]))       # (N*K, HWq)

    # 1x1 conv (+bias) BEFORE the upsample (exact: bilinear weights sum to 1).
    mixed = jnp.dot(w1_ref[...], pooled.astype(w1_ref.dtype),
                    preferred_element_type=jnp.float32) + b1_ref[...]           # (N*K2, HWq)

    # Bilinear x2 upsample (align_corners=False) as a single matmul.
    # Output (N*K2, HW) = (8, 256): full-sublane, lane-dense unmasked store.
    o_ref[...] = jnp.dot(mixed.astype(ut_ref.dtype), ut_ref[...],
                         preferred_element_type=jnp.float32).astype(o_ref.dtype)


@jax.jit
def simplemodel_forward(x, conv_w, conv_b, up_w, up_b):
    """Conv3x3(pad=1)+ReLU -> MaxPool2d(2) -> bilinear x2 upsample -> 1x1 conv.  NCHW in/out."""
    N, C, H, W = x.shape
    K = conv_w.shape[0]
    K2 = up_w.shape[0]
    assert H % 2 == 0 and W % 2 == 0, "MaxPool2d(2) requires even H and W"
    HW, Hq, Wq = H * W, H // 2, W // 2
    HWq = Hq * Wq
    f32, bf16 = jnp.float32, jnp.bfloat16

    # --- 4x4 / stride-2 im2col: patches covering the 3x3 receptive fields of all four conv
    #     outputs inside every 2x2 pooling window.  Rows: (image, tap, channel).
    xp = jnp.pad(x.astype(f32), ((0, 0), (0, 0), (1, 1), (1, 1)))
    taps = [xp[:, :, dy:dy + H:2, dx:dx + W:2]                    # each (N, C, Hq, Wq)
            for dy in range(4) for dx in range(4)]
    patches = jnp.stack(taps, axis=1).reshape(N, 16 * C, HWq)
    patches = patches.reshape(N * 16 * C, HWq).astype(bf16)       # batch stacked on sublanes

    # --- Conv weights: embed the 3x3 kernel at each of the 4 window offsets of a 4x4 tap
    #     grid, then block-diagonal over batch.  Rows: (offset, image, out-channel).
    w4 = jnp.zeros((4, K, C, 4, 4), f32)
    for o, (a, b) in enumerate(((0, 0), (0, 1), (1, 0), (1, 1))):
        w4 = w4.at[o, :, :, a:a + 3, b:b + 3].set(conv_w.astype(f32))
    w4 = w4.transpose(0, 1, 3, 4, 2).reshape(4, K, 16 * C)        # (offset, k, tap*C + c)
    eye = jnp.eye(N, dtype=f32)
    w_big = jnp.einsum("okt,nm->onkmt", w4, eye).reshape(4 * N * K, N * 16 * C).astype(bf16)
    b_big = jnp.tile(conv_b.astype(f32), 4 * N).reshape(4 * N * K, 1)

    # --- Block-diagonal 1x1 conv and flattened bilinear upsample matrix.
    w1 = up_w.reshape(K2, K).astype(f32)
    w1_big = jnp.kron(eye, w1).astype(bf16)                       # (N*K2, N*K)
    b1_big = jnp.tile(up_b.astype(f32), N).reshape(N * K2, 1)
    ut = jnp.asarray(_upsample_flat_matrix_T(H, W), dtype=bf16)   # (HWq, HW)

    out_flat = pl.pallas_call(
        fused_kernel,
        out_shape=jax.ShapeDtypeStruct((N * K2, HW), jnp.float32),
        in_specs=[pl.BlockSpec(memory_space=pltpu.MemorySpace.VMEM)] * 6,
        out_specs=pl.BlockSpec(memory_space=pltpu.MemorySpace.VMEM),
    )(patches, w_big, b_big, w1_big, b1_big, ut)

    return out_flat.reshape(N, K2, H, W).astype(x.dtype)


# --------------------------------------------------------------------------- #
# Pure-JAX reference in the ORIGINAL op order (conv -> pool -> upsample -> 1x1 conv)
# to validate the fused/reordered kernel.
# --------------------------------------------------------------------------- #
def simplemodel_reference(x, conv_w, conv_b, up_w, up_b):
    y = lax.conv_general_dilated(x, conv_w, (1, 1), ((1, 1), (1, 1)),
                                 dimension_numbers=("NCHW", "OIHW", "NCHW"))
    y = jnp.maximum(y + conv_b[None, :, None, None], 0.0)
    p = lax.reduce_window(y, -jnp.inf, lax.max, (1, 1, 2, 2), (1, 1, 2, 2), "VALID")
    H, W = x.shape[2], x.shape[3]
    Ah = jnp.asarray(_bilinear_upsample_matrix(H // 2))
    Aw = jnp.asarray(_bilinear_upsample_matrix(W // 2))
    up = jnp.einsum("hq,nkqr,wr->nkhw", Ah, p, Aw)
    K2 = up_w.shape[0]
    out = jnp.einsum("ok,nkhw->nohw", up_w.reshape(K2, -1), up) + up_b[None, :, None, None]
    return out


if __name__ == "__main__":
    # in_channels == out_channels == 4 so the Upsample's 1x1 conv channel count matches.
    N, C, K, H, W = 2, 4, 4, 16, 16
    key = jax.random.PRNGKey(0)
    kx, kw, kb, kw1, kb1 = jax.random.split(key, 5)

    x = jax.random.normal(kx, (N, C, H, W), jnp.float32)
    conv_w = jax.random.normal(kw, (K, C, 3, 3), jnp.float32) * 0.2   # Conv2d(3x3) weight
    conv_b = jax.random.normal(kb, (K,), jnp.float32) * 0.1           # Conv2d(3x3) bias
    up_w = jax.random.normal(kw1, (K, K, 1, 1), jnp.float32) * 0.2    # Upsample 1x1 conv weight
    up_b = jax.random.normal(kb1, (K,), jnp.float32) * 0.1            # Upsample 1x1 conv bias

    out = jax.block_until_ready(simplemodel_forward(x, conv_w, conv_b, up_w, up_b))
    ref = jax.block_until_ready(simplemodel_reference(x, conv_w, conv_b, up_w, up_b))

    assert out.shape == (N, K, H, W), out.shape
    assert bool(jnp.all(jnp.isfinite(out)))
    max_err = float(jnp.max(jnp.abs(out - ref)))
    # bf16 MXU operands (f32 accumulation) -> loosened tolerance per review.
    assert bool(jnp.allclose(out, ref, atol=5e-2, rtol=5e-2)), max_err
    print("KERNEL_OK")
</pallas_src>

<mosaic_0001>
module attributes {stable_mosaic.version = 11 : i64} {
  func.func @fused_kernel(%arg0: memref<128x64xbf16, #tpu.memory_space<vmem>>, %arg1: memref<32x128xbf16, #tpu.memory_space<vmem>>, %arg2: memref<32x1xf32, #tpu.memory_space<vmem>>, %arg3: memref<8x8xbf16, #tpu.memory_space<vmem>>, %arg4: memref<8x1xf32, #tpu.memory_space<vmem>>, %arg5: memref<64x256xbf16, #tpu.memory_space<vmem>>, %arg6: memref<8x256xf32, #tpu.memory_space<vmem>>) attributes {dimension_semantics = [], scalar_prefetch = 0 : i64, scratch_operands = 0 : i64, tpu.core_type = #tpu.core_type<tc>} {
    %c0 = arith.constant 0 : index
    %c0_0 = arith.constant 0 : index
    %0 = vector.load %arg1[%c0, %c0_0] : memref<32x128xbf16, #tpu.memory_space<vmem>>, vector<32x128xbf16>
    %c0_1 = arith.constant 0 : index
    %c0_2 = arith.constant 0 : index
    %1 = vector.load %arg0[%c0_1, %c0_2] : memref<128x64xbf16, #tpu.memory_space<vmem>>, vector<128x64xbf16>
    %cst = arith.constant dense<0.000000e+00> : vector<32x64xf32>
    %2 = tpu.matmul %0, %1, %cst {dimension_numbers = #tpu.dot_dimension_numbers<[1], [0], [0], [1], [0, 0, 1, 1], [], []>} : vector<32x128xbf16>, vector<128x64xbf16>, vector<32x64xf32> -> vector<32x64xf32>
    %c0_3 = arith.constant 0 : index
    %c0_4 = arith.constant 0 : index
    %3 = vector.load %arg2[%c0_3, %c0_4] : memref<32x1xf32, #tpu.memory_space<vmem>>, vector<32x1xf32>
    %4 = vector.broadcast %3 : vector<32x1xf32> to vector<32x64xf32>
    %5 = arith.addf %2, %4 : vector<32x64xf32>
    %cst_5 = arith.constant 0.000000e+00 : f32
    %6 = vector.broadcast %cst_5 : f32 to vector<32x64xf32>
    %7 = arith.maximumf %5, %6 : vector<32x64xf32>
    %8 = vector.extract_strided_slice %7 {offsets = [0, 0], sizes = [8, 64], strides = [1, 1]} : vector<32x64xf32> to vector<8x64xf32>
    %9 = vector.extract_strided_slice %7 {offsets = [8, 0], sizes = [8, 64], strides = [1, 1]} : vector<32x64xf32> to vector<8x64xf32>
    %10 = arith.maximumf %8, %9 : vector<8x64xf32>
    %11 = vector.extract_strided_slice %7 {offsets = [16, 0], sizes = [8, 64], strides = [1, 1]} : vector<32x64xf32> to vector<8x64xf32>
    %12 = vector.extract_strided_slice %7 {offsets = [24, 0], sizes = [8, 64], strides = [1, 1]} : vector<32x64xf32> to vector<8x64xf32>
    %13 = arith.maximumf %11, %12 : vector<8x64xf32>
    %14 = arith.maximumf %10, %13 : vector<8x64xf32>
    %c0_6 = arith.constant 0 : index
    %c0_7 = arith.constant 0 : index
    %15 = vector.load %arg3[%c0_6, %c0_7] : memref<8x8xbf16, #tpu.memory_space<vmem>>, vector<8x8xbf16>
    %16 = arith.truncf %14 : vector<8x64xf32> to vector<8x64xbf16>
    %cst_8 = arith.constant dense<0.000000e+00> : vector<8x64xf32>
    %17 = tpu.matmul %15, %16, %cst_8 {dimension_numbers = #tpu.dot_dimension_numbers<[1], [0], [0], [1], [0, 0, 1, 1], [], []>} : vector<8x8xbf16>, vector<8x64xbf16>, vector<8x64xf32> -> vector<8x64xf32>
    %c0_9 = arith.constant 0 : index
    %c0_10 = arith.constant 0 : index
    %18 = vector.load %arg4[%c0_9, %c0_10] : memref<8x1xf32, #tpu.memory_space<vmem>>, vector<8x1xf32>
    %19 = vector.broadcast %18 : vector<8x1xf32> to vector<8x64xf32>
    %20 = arith.addf %17, %19 : vector<8x64xf32>
    %21 = arith.truncf %20 : vector<8x64xf32> to vector<8x64xbf16>
    %c0_11 = arith.constant 0 : index
    %c0_12 = arith.constant 0 : index
    %22 = vector.load %arg5[%c0_11, %c0_12] : memref<64x256xbf16, #tpu.memory_space<vmem>>, vector<64x256xbf16>
    %cst_13 = arith.constant dense<0.000000e+00> : vector<8x256xf32>
    %23 = tpu.matmul %21, %22, %cst_13 {dimension_numbers = #tpu.dot_dimension_numbers<[1], [0], [0], [1], [0, 0, 1, 1], [], []>} : vector<8x64xbf16>, vector<64x256xbf16>, vector<8x256xf32> -> vector<8x256xf32>
    %c0_14 = arith.constant 0 : index
    %c0_15 = arith.constant 0 : index
    %24 = vector.load %arg6[%c0_14, %c0_15] : memref<8x256xf32, #tpu.memory_space<vmem>>, vector<8x256xf32>
    tpu.vector_store %arg6[%c0_14, %c0_15], %23 {strides = array<i32>} : memref<8x256xf32, #tpu.memory_space<vmem>>, vector<8x256xf32>,
    return
  }
}

</mosaic_0001>

<bundles_post_ra>
// kernel: tile.13
= control target key start
LH: loop header
LB: loop body
LE: loop exit
PB: predicated region body
PF: predicated region fallthrough
CT: control target
= control target key end

     0   :  { %s22_s0 = inlined_call_operand.vmem [shape: f32[4], index: 0, kind: input, shape index: {}]   ;;  %s23_s1 = inlined_call_operand.vmem [shape: f32[8,4], index: 1, kind: output, shape index: {}]  }
   0x1   :  { %v4_v0 = vld [vmem:[%s22_s0] ss:$0 sm:$0xff] }
   0x2   :  { %5 = vst [vmem:[%s23_s1] sm:$0xff] %v4_v0 }

// kernel: tile.0
= control target key start
LH: loop header
LB: loop body
LE: loop exit
PB: predicated region body
PF: predicated region fallthrough
CT: control target
= control target key end

     0   :  { %vm3_vm0 = vcmask 7168   ;;  %s30_s8 = smov 125   ;;  %s31_s11 = smov 126   ;;  %s57_s0 = inlined_call_operand.vmem [shape: f32[8,4], index: 0, kind: input, shape index: {}]   ;;  %s58_s1 = inlined_call_operand.vmem [shape: f32[32,1], index: 1, kind: output, shape index: {}]  }
   0x1   :  { %v5_v0 = vld [vmem:[%s57_s0] sm:$0xff]   ;;  %s29_s0 = smov 127  }
   0x2   :  { %6 = vrot.lane.b32.xlu0 %v5_v0, %s29_s0  ;;  %18 = vrot.lane.b32.xlu1 %v5_v0, %s30_s8  ;;  %4 = vst.msk [vmem:[%s58_s1] ss:$4 sm:$0xff] %vm3_vm0, %v5_v0  }
   0x6   :  { %12 = vrot.lane.b32.xlu0 %v5_v0, %s31_s11 }
  0x74   :  { %v7_v1 = vpop.permute.xlu0 %6   ;;  %v19_v2 = vpop.permute.xlu1 %18  }
  0x75   :  { %23 = vst.msk [vmem:[%s58_s1 + $0x1] ss:$4 sm:$0xff] %vm3_vm0, %v7_v1   ;;  %25 = vst.msk [vmem:[%s58_s1 + $0x3] ss:$4 sm:$0xff] %vm3_vm0, %v19_v2  }
  0x78   :  { %v13_v3 = vpop.permute.xlu0 %12  }
  0x79   :  { %24 = vst.msk [vmem:[%s58_s1 + $0x2] ss:$4 sm:$0xff] %vm3_vm0, %v13_v3  }

// kernel: tile.18
= control target key start
LH: loop header
LB: loop body
LE: loop exit
PB: predicated region body
PF: predicated region fallthrough
CT: control target
= control target key end

     0   :  { %s22_s0 = inlined_call_operand.vmem [shape: f32[4], index: 0, kind: input, shape index: {}]   ;;  %s23_s1 = inlined_call_operand.vmem [shape: f32[2,4], index: 1, kind: output, shape index: {}]  }
   0x1   :  { %v4_v0 = vld [vmem:[%s22_s0] ss:$0 sm:$0xff] }
   0x2   :  { %5 = vst [vmem:[%s23_s1] sm:$0x3] %v4_v0 }

// kernel: tile.1
= control target key start
LH: loop header
LB: loop body
LE: loop exit
PB: predicated region body
PF: predicated region fallthrough
CT: control target
= control target key end

     0   :  { %s34_s8 = smov 125   ;;  %vm7_vm0 = vcmask 7168   ;;  %s35_s11 = smov 126   ;;  %s61_s0 = inlined_call_operand.vmem [shape: f32[2,4], index: 0, kind: input, shape index: {}]   ;;  %s62_s1 = inlined_call_operand.vmem [shape: f32[8,1], index: 1, kind: output, shape index: {}]  }
   0x1   :  { %v4_v0 = vld [vmem:[%s61_s0] sm:$0x3]  ;;  %s33_s0 = smov 127  }
   0x2   :  { %5 = vst [vmem:[#allocation0] sm:$0x3] %v4_v0 }
   0x9   :  { %v9_v1 = vld [vmem:[#allocation0] sm:$0x3]  }
   0xa   :  { %v21_v2 = vld [vmem:[#allocation0] sm:$0x3]   ;;  %10 = vrot.lane.b32.xlu0 %v9_v1, %s33_s0 }
   0xb   :  { %22 = vrot.lane.b32.xlu1 %v21_v2, %s34_s8  ;;  %v6_v3 = vld [vmem:[#allocation0] sm:$0x3]  }
   0xc   :  { %v15_v4 = vld [vmem:[#allocation0] sm:$0x3]   ;;  %8 = vst.msk [vmem:[%s62_s1] ss:$4 sm:$0x3] %vm7_vm0, %v6_v3  }
   0xe   :  { %16 = vrot.lane.b32.xlu0 %v15_v4, %s35_s11 }
  0x7c   :  { %v11_v5 = vpop.permute.xlu0 %10  }
  0x7d   :  { %v23_v6 = vpop.permute.xlu1 %22   ;;  %27 = vst.msk [vmem:[%s62_s1 + $0x1] ss:$4 sm:$0x3] %vm7_vm0, %v11_v5  }
  0x7e   :  { %29 = vst.msk [vmem:[%s62_s1 + $0x3] ss:$4 sm:$0x3] %vm7_vm0, %v23_v6  }
  0x80   :  { %v17_v7 = vpop.permute.xlu0 %16  }
  0x81   :  { %28 = vst.msk [vmem:[%s62_s1 + $0x2] ss:$4 sm:$0x3] %vm7_vm0, %v17_v7  }

// kernel: simplemodel_forward.1
= control target key start
LH: loop header
LB: loop body
LE: loop exit
PB: predicated region body
PF: predicated region fallthrough
CT: control target
= control target key end

     0   :  { %v425_v1 = vmov 0   ;;  %v426_v16 = vmov 0.0   ;;  %vm427_vm0 = vmmov 0   ;;  %vm196_vm1 = vcmask 1043456   ;;  %s544_s0 = inlined_call_operand.vmem [shape: bf16[128,64], index: 0, kind: input, shape index: {}]   ;;  %s545_s1 = inlined_call_operand.vmem [shape: bf16[32,128], index: 1, kind: input, shape index: {}]   ;;  %s546_s2 = inlined_call_operand.vmem [shape: f32[32,1], index: 2, kind: input, shape index: {}]   ;;  %s547_s4 = inlined_call_operand.vmem [shape: f32[8,1], index: 4, kind: input, shape index: {}]   ;;  %s548_s5 = inlined_call_operand.vmem [shape: bf16[64,256], index: 5, kind: input, shape index: {}]   ;;  %s549_s3 = inlined_call_operand.vmem [shape: bf16[8,8], index: 3, kind: input, shape index: {}]   ;;  %s550_s6 = inlined_call_operand.vmem [shape: f32[8,256], index: 6, kind: output, shape index: {}]  }
   0x1   :  { %v403_v0 = vld [vmem:[%s544_s0] sm:$0xff]   ;;  %401 = vset.pattern.permute.xlu0 %v425_v1  ;;  %402 = vset.pattern.permute.xlu1 %v425_v1  ;;  %v404_v2 = vld [vmem:[%s544_s0 + $0x8] sm:$0xff]   ;;  %v405_v3 = vld [vmem:[%s544_s0 + $0x10] sm:$0xff]   ;;  %vm192_vm2 = vcmask 64512   ;;  %vm289_vm3 = vcmask 523264  }
   0x2   :  { %372 = vmatprep.subr.bf16.mxu0 %v403_v0  ;;  %v406_v4 = vld [vmem:[%s544_s0 + $0x18] sm:$0xff]   ;;  %v411_v5 = vld [vmem:[%s545_s1] sm:$0xff]   ;;  %v46_v7 = vld [vmem:[%s546_s2 + $0x10] sm:$0xff]  ;;  %392 = vmatprep.subr.bf16.mxu1 %v426_v16 }
   0x3   :  { %373 = vmatpush3.bf16.msra.mxu0 %v403_v0  ;;  %388 = vmatprep.mubr.bf16.mxu0 %v411_v5  ;;  %v44_v6 = vld [vmem:[%s546_s2] sm:$0xff]  ;;  %v45_v9 = vld [vmem:[%s546_s2 + $0x8] sm:$0xff]  ;;  %v47_v10 = vld [vmem:[%s546_s2 + $0x18] sm:$0xff] }
   0x4   :  { %374 = vmatprep.subr.bf16.mxu0 %v404_v2  ;;  %50 = vperm.xlu0 %401, %v44_v6   ;;  %v407_v8 = vld [vmem:[%s544_s0 + $0x20] sm:$0xff]   ;;  %v408_v11 = vld [vmem:[%s544_s0 + $0x28] sm:$0xff]   ;;  %v409_v13 = vld [vmem:[%s544_s0 + $0x30] sm:$0xff]  }
   0x5   :  { %60 = vperm.xlu1 %402, %v46_v7   ;;  %v186_v12 = vld [vmem:[%s547_s4] sm:$0xff]  ;;  %v410_v14 = vld [vmem:[%s544_s0 + $0x38] sm:$0xff]   ;;  %v412_v15 = vld [vmem:[%s545_s1 + $0x8] sm:$0xff]   ;;  %394 = vmatprep.mubr.msk.bf16.mxu1 %vm427_vm0, %v426_v16 }
   0x6   :  { %v415_v37 = vld [vmem:[%s548_s5 + $0x4] ss:$8 sps:$4 sm:$0xff]   ;;  %v184_v39 = vld [vmem:[%s549_s3] sm:$0xf]  ;;  %v418_v41 = vld [vmem:[%s548_s5 + $0x14] ss:$8 sps:$4 sm:$0xff]  }
   0x7   :  { %375 = vmatpush3.bf16.msra.mxu0 %v404_v2  ;;  %v413_v40 = vld [vmem:[%s548_s5] ss:$8 sps:$4 sm:$0xff]   ;;  %v416_v42 = vld [vmem:[%s548_s5 + $0x10] ss:$8 sps:$4 sm:$0xff]   ;;  %v421_v43 = vld [vmem:[%s548_s5 + $0x24] ss:$8 sps:$4 sm:$0xff]  }
   0x8   :  { %376 = vmatprep.subr.bf16.mxu0 %v405_v3  ;;  %55 = vperm.xlu0 %401, %v45_v9   ;;  %v419_v44 = vld [vmem:[%s548_s5 + $0x20] ss:$8 sps:$4 sm:$0xff]   ;;  %v424_v45 = vld [vmem:[%s548_s5 + $0x34] ss:$8 sps:$4 sm:$0xff]   ;;  %v422_v46 = vld [vmem:[%s548_s5 + $0x30] ss:$8 sps:$4 sm:$0xff]  }
   0x9   :  { %65 = vperm.xlu1 %402, %v47_v10  }
   0xb   :  { %377 = vmatpush3.bf16.msra.mxu0 %v405_v3 }
   0xc   :  { %378 = vmatprep.subr.bf16.mxu0 %v406_v4  ;;  %189 = vperm.xlu0 %401, %v186_v12  }
   0xf   :  { %379 = vmatpush3.bf16.msra.mxu0 %v406_v4 }
  0x10   :  { %380 = vmatprep.subr.bf16.mxu0 %v407_v8 }
  0x13   :  { %381 = vmatpush3.bf16.msra.mxu0 %v407_v8 }
  0x14   :  { %382 = vmatprep.subr.bf16.mxu0 %v408_v11 }
  0x17   :  { %383 = vmatpush3.bf16.msra.mxu0 %v408_v11 }
  0x18   :  { %384 = vmatprep.subr.bf16.mxu0 %v409_v13 }
  0x1b   :  { %385 = vmatpush3.bf16.msra.mxu0 %v409_v13 }
  0x1c   :  { %386 = vmatprep.subr.bf16.mxu0 %v410_v14 }
  0x1f   :  { %387 = vmatpush3.bf16.msra.mxu0 %v410_v14 }
  0x22   :  { %389 = vmatmul.mubr.bf16.vlgmr.msra.gmra.mrb[0].mxu0 %v412_v15 }
  0x83   :  { %v51_v18 = vpop.permute.xlu0 %50 }
  0x84   :  { %v61_v17 = vpop.permute.xlu1 %60 }
  0x87   :  { %v56_v25 = vpop.permute.xlu0 %55 }
  0x88   :  { %v66_v22 = vpop.permute.xlu1 %65 }
  0x8b   :  { %v190_v47 = vpop.permute.xlu0 %189 }
  0xf5   :  { %v390_v19 = vpop.f32.mrb[0].mxu0 }
  0xf6   :  { %v171_v20 = vadd.f32 %v390_v19, %v61_v17  ;;  %v162_v21 = vpop.f32.mrb[1].mxu0 }
  0xf7   :  { %v163_v23 = vadd.f32 %v162_v21, %v51_v18  ;;  %v391_v24 = vpop.f32.mrb[2].mxu0 }
  0xf8   :  { %v174_v26 = vadd.f32 %v391_v24, %v66_v22  ;;  %v165_v27 = vpop.f32.mrb[3].mxu0  ;;  %v179_v29 = vmax.f32 %v171_v20, 0.0 }
  0xf9   :  { %v166_v28 = vadd.f32 %v165_v27, %v56_v25  ;;  %v177_v31 = vmax.f32 %v163_v23, 0.0 }
  0xfa   :  { %v180_v30 = vmax.f32 %v174_v26, 0.0 }
  0xfb   :  { %v178_v32 = vmax.f32 %v166_v28, 0.0 }
  0xfc   :  { %v182_v33 = vmax.f32 %v179_v29, %v180_v30 }
  0xfd   :  { %v181_v34 = vmax.f32 %v177_v31, %v178_v32 }
  0xff   :  { %v183_v35 = vmax.f32 %v181_v34, %v182_v33 }
 0x101   :  { %v185_v36 = vpack.c.bf16 %v183_v35, %v183_v35 }
 0x103   :  { %v198_v38 = vsel %vm196_vm1, %v185_v36, 0 }
 0x104   :  { %393 = vmatpush3.bf16.msra.mxu1 %v198_v38 }
 0x105   :  { %293 = vmatprep.subr.bf16.mxu1 %v415_v37 }
 0x107   :  { %395 = vmatmul.mubr.msk.bf16.vlgmr.msra.gmra.mrb[0].mxu1 %vm192_vm2, %v184_v39 }
 0x108   :  { %294 = vmatpush1.bf16.msra.mxu1 %v413_v40  ;;  %325 = vmatprep.mubr.bf16.mxu1 %v425_v1 }
 0x109   :  { %295 = vmatprep.subr.bf16.mxu1 %v418_v41 }
 0x10c   :  { %296 = vmatpush1.bf16.msra.mxu1 %v416_v42 }
 0x10d   :  { %297 = vmatprep.subr.bf16.mxu1 %v421_v43 }
 0x110   :  { %298 = vmatpush1.bf16.msra.mxu1 %v419_v44 }
 0x111   :  { %299 = vmatprep.subr.bf16.mxu1 %v424_v45 }
 0x114   :  { %300 = vmatpush1.bf16.msra.mxu1 %v422_v46 }
 0x1da   :  { %v234_v48 = vpop.f32.mrb[0].mxu1 }
 0x1db   :  { %v235_v49 = vadd.f32 %v234_v48, %v190_v47  ;;  %v396_v50 = vpop.f32.mrb[1].mxu1 }
 0x1dc   :  { %v237_v51 = vpop.f32.mrb[2].mxu1 }
 0x1dd   :  { %v240_v52 = vpack.c.bf16 %v235_v49, %v235_v49  ;;  %v397_v53 = vpop.f32.mrb[3].mxu1 }
 0x1df   :  { %359 = vmatmul.mubr.msk.bf16.vlgmr.msra.gmra.mrb[4].mxu1 %vm289_vm3, %v240_v52 }
 0x2b2   :  { %v327_v54 = vpop.f32.mrb[4].mxu1 }
 0x2b3   :  { %334 = vst [vmem:[%s550_s6] sm:$0xff] %v327_v54  ;;  %v329_v55 = vpop.f32.mrb[5].mxu1 }
 0x2b4   :  { %335 = vst [vmem:[%s550_s6 + $0x8] sm:$0xff] %v329_v55  ;;  %v331_v56 = vpop.f32.mrb[6].mxu1 }
 0x2b5   :  { %v332_v57 = vpop.f32.mrb[7].mxu1 }

</bundles_post_ra>
